<compile_context>
chip_gen: v6e
topology: v6e:2x2x1
jax: 0.10.0
libtpu: 0.0.40
codegen_flags: <defaults>
</compile_context>

<pallas_src>
import functools

import numpy as np
import jax
import jax.numpy as jnp
from jax import lax
from jax.experimental import pallas as pl
from jax.experimental.pallas import tpu as pltpu


# --------------------------------------------------------------------------- #
# tiling helpers
# --------------------------------------------------------------------------- #
_VMEM_BLOCK_BUDGET = 12 << 20   # bytes per input block (double-buffered -> ~24 MiB live)
_VMEM_LIMIT_BYTES = 40 << 20    # scoped VMEM cap: safe on v7x (64 MiB) and v5e/v6e (128 MiB)


def _round_up(x, m):
    return ((x + m - 1) // m) * m


def _min_sublane(dtype):
    """Minimum legal sublane tile for this dtype: 8 (f32), 16 (bf16), 32 (int8/fp8)."""
    itemsize = jnp.dtype(dtype).itemsize
    return 8 * max(1, 4 // itemsize)


def _mean_tiles(b, t, h, itemsize, min_sub, budget_bytes):
    """Jointly size (b_tile, t_tile):
    - b_tile: full B if tiny, else a multiple of min_sub capped at ceil(B/2)
      (>= 2 batch programs so both v7x TensorCores get work) and at 128 rows,
    - t_tile: the whole time extent if it fits the per-block VMEM budget,
      otherwise the largest multiple of min_sub that does."""
    if b <= min_sub:
        b_tile = b
    else:
        b_tile = min(128, _round_up(-(-b // 2), min_sub))

    row_bytes = h * itemsize

    def rows_fit(bt):
        return budget_bytes // max(1, bt * row_bytes)

    # Shrink the batch tile (multiples of min_sub) until a minimal time tile fits.
    while b_tile > min_sub and rows_fit(b_tile) < min_sub:
        b_tile = max(min_sub, ((b_tile // 2) // min_sub) * min_sub)

    rows = rows_fit(b_tile)
    if t <= max(rows, min_sub):
        t_tile = t                                       # whole reduction in one block
    else:
        t_tile = max(min_sub, (rows // min_sub) * min_sub)
    return b_tile, t_tile


# --------------------------------------------------------------------------- #
# kernels
# --------------------------------------------------------------------------- #
def _mean_kernel(x_ref, o_ref, acc_ref, *, t_total, t_tile, mask_tail):
    t = pl.program_id(1)
    n_t = pl.num_programs(1)

    @pl.when(t == 0)
    def _init():
        acc_ref[...] = jnp.zeros_like(acc_ref)

    if mask_tail:
        # Mask cost (iota/compare/select) only paid on the final, ragged time tile.
        @pl.when(t < n_t - 1)
        def _body():
            acc_ref[...] += jnp.sum(x_ref[...].astype(jnp.float32), axis=1)

        @pl.when(t == n_t - 1)
        def _tail():
            x = x_ref[...].astype(jnp.float32)           # (b_tile, t_tile, H)
            pos = t * t_tile + lax.broadcasted_iota(jnp.int32, x.shape, 1)
            x = jnp.where(pos < t_total, x, 0.0)
            acc_ref[...] += jnp.sum(x, axis=1)
    else:
        acc_ref[...] += jnp.sum(x_ref[...].astype(jnp.float32), axis=1)

    @pl.when(t == n_t - 1)
    def _finalize():
        o_ref[...] = (acc_ref[...] * (1.0 / t_total)).astype(o_ref.dtype)


def _last_kernel(x_ref, o_ref, *, row_in_tile):
    o_ref[...] = x_ref[:, row_in_tile, :]


# --------------------------------------------------------------------------- #
# pallas_call wrappers
# --------------------------------------------------------------------------- #
def _mean_pallas(x, block_budget_bytes=_VMEM_BLOCK_BUDGET):
    b, t, h = x.shape
    itemsize = jnp.dtype(x.dtype).itemsize
    min_sub = _min_sublane(x.dtype)
    b_tile, t_tile = _mean_tiles(b, t, h, itemsize, min_sub, block_budget_bytes)
    n_b = pl.cdiv(b, b_tile)
    n_t = pl.cdiv(t, t_tile)

    kernel = functools.partial(
        _mean_kernel, t_total=t, t_tile=t_tile, mask_tail=(t % t_tile != 0)
    )
    cost = pl.CostEstimate(
        flops=b * t * h,
        transcendentals=0,
        bytes_accessed=b * t * h * itemsize + b * h * itemsize,
    )
    return pl.pallas_call(
        kernel,
        out_shape=jax.ShapeDtypeStruct((b, h), x.dtype),
        grid=(n_b, n_t),
        in_specs=[pl.BlockSpec((b_tile, t_tile, h), lambda i, j: (i, j, 0))],
        out_specs=pl.BlockSpec((b_tile, h), lambda i, j: (i, 0)),
        scratch_shapes=[pltpu.VMEM((b_tile, h), jnp.float32)],
        compiler_params=pltpu.CompilerParams(
            dimension_semantics=("parallel", "arbitrary"),
            vmem_limit_bytes=_VMEM_LIMIT_BYTES,
        ),
        cost_estimate=cost,
    )(x)


def _last_pallas(x, block_budget_bytes=_VMEM_BLOCK_BUDGET):
    b, t, h = x.shape
    itemsize = jnp.dtype(x.dtype).itemsize
    min_sub = _min_sublane(x.dtype)
    # Only DMA the minimal (<= min_sub)-row time tile containing the last step.
    t_tile = t if t <= min_sub else min_sub
    blk = (t - 1) // t_tile        # static block index along time
    row = (t - 1) % t_tile         # static row within that tile

    if b <= min_sub:
        b_tile = b
    else:
        rows_cap = block_budget_bytes // max(1, t_tile * h * itemsize)
        cap = max(min_sub, (rows_cap // min_sub) * min_sub)
        # ceil(B/2) keeps >= 2 programs (v7x megacore) while covering B in <= 2 steps.
        b_tile = min(_round_up(-(-b // 2), min_sub), 512, cap)

    kernel = functools.partial(_last_kernel, row_in_tile=row)
    return pl.pallas_call(
        kernel,
        out_shape=jax.ShapeDtypeStruct((b, h), x.dtype),
        grid=(pl.cdiv(b, b_tile),),
        in_specs=[pl.BlockSpec((b_tile, t_tile, h), lambda i: (i, blk, 0))],
        out_specs=pl.BlockSpec((b_tile, h), lambda i: (i, 0)),
        compiler_params=pltpu.CompilerParams(
            dimension_semantics=("parallel",),
            vmem_limit_bytes=_VMEM_LIMIT_BYTES,
        ),
    )(x)


# --------------------------------------------------------------------------- #
# module-equivalent forward
# --------------------------------------------------------------------------- #
def reshape_output_forward(x, method="mean", block_budget_bytes=_VMEM_BLOCK_BUDGET):
    """x: (batch, time, hidden) -> (batch, hidden)."""
    if method == "last":
        return _last_pallas(x, block_budget_bytes)
    if method == "mean":
        return _mean_pallas(x, block_budget_bytes)
    raise ValueError("Method must be one of {`mean`, `last`}")


class ReshapeOutput:
    """Reshape LSTM output to remove timestep dimension (Pallas forward)."""

    def __init__(self, method: str = "mean"):
        self.method = method

    def __call__(self, x):
        return reshape_output_forward(x, self.method)


# --------------------------------------------------------------------------- #
# demo / correctness check
# --------------------------------------------------------------------------- #
if __name__ == "__main__":
    key = jax.random.PRNGKey(0)
    k1, k2, k3 = jax.random.split(key, 3)

    # Small shapes implied by the module: LSTM output (batch, timesteps, hidden).
    x = jax.random.normal(k1, (2, 8, 32), dtype=jnp.float32)
    y_mean = jax.block_until_ready(ReshapeOutput("mean")(x))
    y_last = jax.block_until_ready(ReshapeOutput("last")(x))
    np.testing.assert_allclose(
        np.asarray(y_mean), np.asarray(jnp.mean(x, axis=1)), rtol=1e-6, atol=1e-6
    )
    np.testing.assert_allclose(np.asarray(y_last), np.asarray(x[:, -1, :]), rtol=0, atol=0)

    # Ragged batch tiles; the small test budget forces a multi-tile time
    # reduction with a masked ragged time tail (regression for tail padding).
    x2 = jax.random.normal(k2, (10, 300, 256), dtype=jnp.float32)
    y2_mean_small = jax.block_until_ready(
        reshape_output_forward(x2, "mean", block_budget_bytes=64 << 10)
    )
    y2_mean_big = jax.block_until_ready(reshape_output_forward(x2, "mean"))
    y2_last = jax.block_until_ready(reshape_output_forward(x2, "last"))
    ref2 = np.asarray(jnp.mean(x2, axis=1))
    np.testing.assert_allclose(np.asarray(y2_mean_small), ref2, rtol=1e-5, atol=1e-5)
    np.testing.assert_allclose(np.asarray(y2_mean_big), ref2, rtol=1e-5, atol=1e-5)
    np.testing.assert_allclose(
        np.asarray(y2_last), np.asarray(x2[:, -1, :]), rtol=0, atol=0
    )

    # bf16 (common LSTM output dtype) exercises the dtype-aware (16,128) tiling.
    x3 = jax.random.normal(k3, (12, 50, 192), dtype=jnp.float32).astype(jnp.bfloat16)
    y3_mean = jax.block_until_ready(reshape_output_forward(x3, "mean"))
    y3_last = jax.block_until_ready(reshape_output_forward(x3, "last"))
    ref3 = np.asarray(jnp.mean(x3.astype(jnp.float32), axis=1))
    np.testing.assert_allclose(
        np.asarray(y3_mean.astype(jnp.float32)), ref3, rtol=1e-2, atol=1e-2
    )
    np.testing.assert_allclose(
        np.asarray(y3_last.astype(jnp.float32)),
        np.asarray(x3[:, -1, :].astype(jnp.float32)),
        rtol=0,
        atol=0,
    )

    print("KERNEL_OK")
</pallas_src>

<mosaic_0001>
module attributes {stable_mosaic.version = 11 : i64} {
  func.func @_mean_kernel(%arg0: i32, %arg1: i32, %arg2: memref<2x8x32xf32, #tpu.memory_space<vmem>>, %arg3: memref<2x32xf32, #tpu.memory_space<vmem>>, %arg4: memref<2x32xf32, #tpu.memory_space<vmem>>) attributes {dimension_semantics = [#tpu.dimension_semantics<parallel>, #tpu.dimension_semantics<arbitrary>], iteration_bounds = array<i64: 1, 1>, scalar_prefetch = 0 : i64, scratch_operands = 1 : i64, tpu.core_type = #tpu.core_type<tc>, window_params = [{transform_indices = @transform_0, window_bounds = array<i64: 2, 8, 32>}, {transform_indices = @transform_1, window_bounds = array<i64: 2, 32>}]} {
    %c0_i32 = arith.constant 0 : i32
    %0 = arith.cmpi eq, %arg1, %c0_i32 : i32
    %1 = arith.extui %0 : i1 to i32
    %c0_i32_0 = arith.constant 0 : i32
    %2 = arith.cmpi ne, %1, %c0_i32_0 : i32
    scf.if %2 {
      %cst_9 = arith.constant 0.000000e+00 : f32
      %11 = vector.broadcast %cst_9 : f32 to vector<2x32xf32>
      %c0_10 = arith.constant 0 : index
      %c0_11 = arith.constant 0 : index
      %12 = vector.load %arg4[%c0_10, %c0_11] : memref<2x32xf32, #tpu.memory_space<vmem>>, vector<2x32xf32>
      tpu.vector_store %arg4[%c0_10, %c0_11], %11 {strides = array<i32>} : memref<2x32xf32, #tpu.memory_space<vmem>>, vector<2x32xf32>,
    } else {
    }
    %c0 = arith.constant 0 : index
    %c0_1 = arith.constant 0 : index
    %3 = vector.load %arg4[%c0, %c0_1] : memref<2x32xf32, #tpu.memory_space<vmem>>, vector<2x32xf32>
    %c0_2 = arith.constant 0 : index
    %c0_3 = arith.constant 0 : index
    %c0_4 = arith.constant 0 : index
    %4 = vector.load %arg2[%c0_2, %c0_3, %c0_4] : memref<2x8x32xf32, #tpu.memory_space<vmem>>, vector<2x8x32xf32>
    %cst = arith.constant dense<0.000000e+00> : vector<2x32xf32>
    %5 = vector.multi_reduction <add>, %4, %cst [1] : vector<2x8x32xf32> to vector<2x32xf32>
    %6 = arith.addf %3, %5 : vector<2x32xf32>
    %c0_5 = arith.constant 0 : index
    %c0_6 = arith.constant 0 : index
    %7 = vector.load %arg4[%c0_5, %c0_6] : memref<2x32xf32, #tpu.memory_space<vmem>>, vector<2x32xf32>
    tpu.vector_store %arg4[%c0_5, %c0_6], %6 {strides = array<i32>} : memref<2x32xf32, #tpu.memory_space<vmem>>, vector<2x32xf32>,
    %c0_i32_7 = arith.constant 0 : i32
    %8 = arith.cmpi eq, %arg1, %c0_i32_7 : i32
    %9 = arith.extui %8 : i1 to i32
    %c0_i32_8 = arith.constant 0 : i32
    %10 = arith.cmpi ne, %9, %c0_i32_8 : i32
    scf.if %10 {
      %c0_9 = arith.constant 0 : index
      %c0_10 = arith.constant 0 : index
      %11 = vector.load %arg4[%c0_9, %c0_10] : memref<2x32xf32, #tpu.memory_space<vmem>>, vector<2x32xf32>
      %cst_11 = arith.constant 1.250000e-01 : f32
      %12 = vector.broadcast %cst_11 : f32 to vector<2x32xf32>
      %13 = arith.mulf %11, %12 : vector<2x32xf32>
      %c0_12 = arith.constant 0 : index
      %c0_13 = arith.constant 0 : index
      %14 = vector.load %arg3[%c0_12, %c0_13] : memref<2x32xf32, #tpu.memory_space<vmem>>, vector<2x32xf32>
      tpu.vector_store %arg3[%c0_12, %c0_13], %13 {strides = array<i32>} : memref<2x32xf32, #tpu.memory_space<vmem>>, vector<2x32xf32>,
    } else {
    }
    return
  }
  func.func @transform_0(%arg0: i32, %arg1: i32) -> (i32, i32, i32) {
    %c0_i32 = arith.constant 0 : i32
    %c0_i32_0 = arith.constant 0 : i32
    return %arg0, %arg1, %c0_i32 : i32, i32, i32
  }
  func.func @transform_1(%arg0: i32, %arg1: i32) -> (i32, i32) {
    %c0_i32 = arith.constant 0 : i32
    %c0_i32_0 = arith.constant 0 : i32
    return %arg0, %c0_i32 : i32, i32
  }
}

</mosaic_0001>

<bundles_post_ra>
// kernel: tpu_custom_call.1
= control target key start
LH: loop header
LB: loop body
LE: loop exit
PB: predicated region body
PF: predicated region fallthrough
CT: control target
= control target key end

     0   :  { %6 = vsyncpa [#allocation4], 0  ;;  %s149_s0 = inlined_call_operand.hbm [shape: f32[2,8,32], index: 0, kind: input, shape index: {}]   ;;  %s150_s1 = inlined_call_operand.hbm [shape: f32[2,32], index: 1, kind: output, shape index: {}]  }
   0x1   :  { %7 = vsyncpa [#allocation5], 0  ;;  %s125_s6 = smov [#allocation3]  }
   0x2   :  { %s13_s7 = sshll.u32 %s125_s6, 4  ;;  %s14_s7 = int_to_ptr.vmem [resolvable:$true] %s13_s7 }
   0x3   :  { %s89_s8 = scalar_lea.vmem %s14_s7, 256  ;;  %p94_p1 = scmp.lt.s32.totalorder %s14_s7, %s14_s7 }
   0x4   :  { %p90_p0 = scmp.ne.s32.totalorder %s14_s7, %s89_s8  ;;  %p95_p2 = scmp.lt.s32.totalorder %s89_s8, %s89_s8 }
   0x6   :  { %p96_p3 = por %p95_p2, %p94_p1 }
   0x8   :  { %p97_p4 = pnand %p96_p3, %p90_p0 }
   0xa   :  { %100 = shalt.err (!%p97_p4)
}
   0xb   :  { %s126_s9 = smov 128   ;;  %s127_s10 = smov 8  }
   0xc   :  { %19 = dma.hbm_to_vmem [thread:$0]  %s149_s0, 256, %s14_s7, [#allocation4], %s126_s9, %s126_s9, %s127_s10  }
   0xd   :  { %121 = dma.done.wait [#allocation4], 256  }
   0xe   :  { %122 = vsyncadd [#allocation4], 4294967040  ;;  %vm27_vm0 = vcmask 254976   ;;  %v128_v0 = vmov 0.0   ;;  %vm32_vm1 = vcmask 261120   ;;  %v30_v1 = vld [vmem:[#allocation3] sm:$0xff] }
   0xf   :  { %28 = vst.msk [vmem:[#allocation2] sm:$0x3] %vm27_vm0, %v128_v0  ;;  %v31_v2 = vld [vmem:[#allocation3 + $0x8] sm:$0xff]  ;;  %v33_v3 = vsel %vm32_vm1, %v30_v1, 0.0  ;;  %vm49_vm2 = vcmask 1041409   ;;  %s129_s0 = smov [#allocation6]  }
  0x10   :  { %v40_v4 = vsel %vm32_vm1, %v31_v2, 0.0  ;;  %v34_v5 = vrot.slane %v33_v3, 4  ;;  %s67_s13 = sshll.u32 %s129_s0, 4  ;;  %s68_s13 = int_to_ptr.vmem [resolvable:$true] %s67_s13 }
  0x11   :  { %v41_v6 = vrot.slane %v40_v4, 4  ;;  %s101_s14 = scalar_lea.vmem %s68_s13, 32  ;;  %p106_p6 = scmp.lt.s32.totalorder %s68_s13, %s68_s13 }
  0x12   :  { %v35_v7 = vadd.f32 %v34_v5, %v33_v3  ;;  %p102_p5 = scmp.ne.s32.totalorder %s68_s13, %s101_s14  ;;  %p107_p7 = scmp.lt.s32.totalorder %s101_s14, %s101_s14 }
  0x13   :  { %v42_v8 = vadd.f32 %v41_v6, %v40_v4 }
  0x14   :  { %v36_v9 = vrot.slane %v35_v7, 2  ;;  %p108_p8 = por %p107_p7, %p106_p6 }
  0x15   :  { %v43_v10 = vrot.slane %v42_v8, 2 }
  0x16   :  { %v37_v11 = vadd.f32 %v36_v9, %v35_v7  ;;  %v29_v15 = vld [vmem:[#allocation2] sm:$0x3]  ;;  %p109_p9 = pnand %p108_p8, %p102_p5 }
  0x17   :  { %v44_v12 = vadd.f32 %v43_v10, %v42_v8 }
  0x18   :  { %v38_v13 = vrot.slane %v37_v11, 1 }
  0x19   :  { %v45_v14 = vrot.slane %v44_v12, 1 }
  0x1a   :  { %v39_v16 = vadd.f32 %v38_v13, %v37_v11 }
  0x1b   :  { %v46_v17 = vadd.f32 %v45_v14, %v44_v12 }
  0x1d   :  { %v50_v18 = vsel %vm49_vm2, %v46_v17, %v39_v16 }
  0x1e   :  { %v52_v19 = vadd.f32 %v50_v18, %v29_v15 }
  0x20   :  { %54 = vst.msk [vmem:[#allocation2] sm:$0x3] %vm27_vm0, %v52_v19 }
  0x27   :  { %v58_v20 = vld [vmem:[#allocation2] sm:$0x3] }
  0x28   :  { %v59_v21 = vmul.f32 0.125, %v58_v20 }
  0x2a   :  { %60 = vst.msk [vmem:[#allocation6] sm:$0x3] %vm27_vm0, %v59_v21 }
  0x2b   :  { %112 = shalt.err (!%p109_p9)
}
  0x2c   :  { %70 = dma.vmem_to_hbm [thread:$0]  %s68_s13, 32, %s150_s1, [#allocation5]  }
  0x2d   :  { %123 = dma.done.wait [#allocation5], 32  }
  0x2e   :  { %124 = vsyncadd [#allocation5], 4294967264 }
  0x2f   :  { %74 = vsyncpa [#allocation4], 1 }
  0x30   :  { %75 = vsyncpa [#allocation5], 1 }

</bundles_post_ra>
